<compile_context>
chip_gen: v5e
topology: v5e:2x2
jax: 0.10.0
libtpu: 0.0.40
codegen_flags: <defaults>
</compile_context>

<pallas_src>
import functools

import jax
import jax.numpy as jnp
from jax.experimental import pallas as pl
from jax.experimental.pallas import tpu as pltpu


def _gcn_train_kernel(*refs, has_bias):
    """Training: out = ((A @ X) * mask) @ W [+ bias] for one row tile."""
    a_ref, x_ref, w_ref, m_ref = refs[0], refs[1], refs[2], refs[3]
    b_ref = refs[4] if has_bias else None
    o_ref = refs[-1]

    # bf16 x bf16 on the MXU, f32 accumulation.
    h = jnp.dot(a_ref[...], x_ref[...], preferred_element_type=jnp.float32)
    h = h * m_ref[...].astype(jnp.float32)       # dropout (mask pre-scaled by 1/(1-p))
    out = jnp.dot(h, w_ref[...], preferred_element_type=jnp.float32)
    if has_bias:
        out = out + b_ref[...]
    o_ref[...] = out.astype(o_ref.dtype)


def _gcn_eval_kernel(*refs, has_bias):
    """Eval: dropout is identity and X @ W is precomputed in the wrapper, so the
    kernel is a single streamed A_tile @ XW contraction."""
    a_ref, xw_ref = refs[0], refs[1]
    b_ref = refs[2] if has_bias else None
    o_ref = refs[-1]

    out = jnp.dot(a_ref[...], xw_ref[...], preferred_element_type=jnp.float32)
    if has_bias:
        out = out + b_ref[...]
    o_ref[...] = out.astype(o_ref.dtype)


def _round_up(x, m):
    return ((x + m - 1) // m) * m


def _vmem_estimate(tm, N, F, O_pad, training, has_bias, resident_bufs=2):
    """Rough full-footprint VMEM estimate (bytes) for one grid step."""
    b = 0
    b += 2 * tm * N * 2            # A tiles: bf16, double-buffered stream
    b += 2 * tm * O_pad * 4        # out tiles: f32, double-buffered stream
    b += tm * O_pad * 4            # out compute intermediate (f32)
    if training:
        b += 2 * tm * F * 2        # mask tiles: bf16, double-buffered stream
        b += tm * F * 4            # h = A @ X intermediate (f32)
        b += resident_bufs * (N * F * 2 + F * O_pad * 4)   # X (bf16) + W (f32)
    else:
        b += resident_bufs * (N * O_pad * 2)               # XW (bf16)
    if has_bias:
        b += resident_bufs * O_pad * 4
    return b


def _pick_row_tile(N, F, O_pad, training, has_bias, budget_bytes=40 << 20):
    """Largest row tile whose full VMEM footprint fits the budget.
    40 MiB target leaves headroom on v7x (64 MiB / TensorCore); v5e/v6e have
    128 MiB physical so the same budget is safe there too."""
    tm = min(1024, N)
    while tm > 16 and _vmem_estimate(tm, N, F, O_pad, training, has_bias) > budget_bytes:
        tm //= 2
    if tm < N:
        tm = max(16, (tm // 16) * 16)   # sublane-friendly for bf16 tiles
    return min(tm, N)


def graph_convolve(A_norm, X, W, bias=None, *, dropout_key=None,
                   training=True, p=0.2):
    """Pallas GraphConvolve forward. Returns (N, O) float32."""
    N, N2 = A_norm.shape
    assert N == N2
    Nx, F = X.shape
    assert Nx == N
    Fw, O = W.shape
    assert Fw == F

    has_bias = bias is not None
    use_dropout = bool(training) and p > 0.0

    # Lane-dense output: pad the output width to a multiple of 128 so the
    # (TM, O_pad) stores are unmasked; sliced back to O below.
    O_pad = O if O % 128 == 0 else _round_up(O, 128)

    # Stream the O(N^2) A term in bf16; accumulate in f32 on the MXU.
    A_bf = A_norm.astype(jnp.bfloat16)
    W32 = W.astype(jnp.float32)
    if O_pad != O:
        W32 = jnp.pad(W32, ((0, 0), (0, O_pad - O)))

    b2d = None
    if has_bias:
        b2d = bias.astype(jnp.float32).reshape(1, O)
        if O_pad != O:
            b2d = jnp.pad(b2d, ((0, 0), (0, O_pad - O)))

    TM = _pick_row_tile(N, F, O_pad, use_dropout, has_bias)
    n_blocks = pl.cdiv(N, TM)

    if use_dropout:
        if dropout_key is None:
            dropout_key = jax.random.PRNGKey(0)
        # Keep with prob (1 - p); kept values pre-scaled by 1/(1 - p).
        # 0.0 and 1.25 are exact in bf16, so the mask streams at half the
        # bytes with no precision loss.
        u = jax.random.uniform(dropout_key, (N, F), dtype=jnp.float32)
        mask = jnp.where(u >= p, 1.0 / (1.0 - p), 0.0).astype(jnp.bfloat16)
        X_bf = X.astype(jnp.bfloat16)
        arrays = [A_bf, X_bf, W32, mask]
        kernel = functools.partial(_gcn_train_kernel, has_bias=has_bias)
        flops = 2 * N * N * F + N * F + 2 * N * F * O_pad
    else:
        # Hoist X @ W out of the per-block loop: compute once, stream A
        # against the (N, O_pad) result.
        XW = (X.astype(jnp.float32) @ W32).astype(jnp.bfloat16)
        arrays = [A_bf, XW]
        kernel = functools.partial(_gcn_eval_kernel, has_bias=has_bias)
        flops = 2 * N * N * O_pad

    if has_bias:
        arrays.append(b2d)
        flops += N * O_pad

    bytes_accessed = (sum(int(a.size) * a.dtype.itemsize for a in arrays)
                      + N * O_pad * 4)
    cost = pl.CostEstimate(flops=flops, transcendentals=0,
                           bytes_accessed=bytes_accessed)

    # Explicit scoped-VMEM limit: v5e defaults to 16 MiB, v6e/v7x to 32 MiB;
    # cap at 48 MiB to keep headroom inside v7x's 64 MiB per-TensorCore VMEM.
    vmem_est = _vmem_estimate(TM, N, F, O_pad, use_dropout, has_bias)
    vmem_limit = int(min(48 << 20, max(32 << 20, 2 * vmem_est)))

    def run(single_buffer_residents):
        resident_mode = pl.Buffered(1) if single_buffer_residents else None

        def resident(shape):
            if resident_mode is None:
                return pl.BlockSpec(shape, lambda i: (0,) * len(shape))
            return pl.BlockSpec(shape, lambda i: (0,) * len(shape),
                                pipeline_mode=resident_mode)

        in_specs = [pl.BlockSpec((TM, N), lambda i: (i, 0))]        # A: row-streamed
        if use_dropout:
            in_specs += [resident((N, F)),                          # X resident
                         resident((F, O_pad)),                      # W resident
                         pl.BlockSpec((TM, F), lambda i: (i, 0))]   # mask: row-streamed
        else:
            in_specs += [resident((N, O_pad))]                      # XW resident
        if has_bias:
            in_specs += [resident((1, O_pad))]

        return pl.pallas_call(
            kernel,
            out_shape=jax.ShapeDtypeStruct((N, O_pad), jnp.float32),
            grid=(n_blocks,),
            in_specs=in_specs,
            out_specs=pl.BlockSpec((TM, O_pad), lambda i: (i, 0)),
            compiler_params=pltpu.CompilerParams(
                dimension_semantics=("parallel",),   # row blocks are independent
                vmem_limit_bytes=vmem_limit),
            cost_estimate=cost,
        )(*arrays)

    try:
        out = run(True)
    except Exception:
        # Some JAX versions reject pipeline_mode / Buffered(1); fall back to
        # default double buffering for the resident operands.
        out = run(False)

    if O_pad != O:
        out = out[:, :O]
    return out


if __name__ == "__main__":
    # Small, deterministic problem: N=64 nodes, input_size=32, output_size=16.
    N, input_size, output_size = 64, 32, 16

    key = jax.random.PRNGKey(0)
    k_a, k_x, k_w, k_b, k_drop = jax.random.split(key, 5)

    # Symmetric-normalized adjacency (self-loops + D^{-1/2} A D^{-1/2}).
    adj = (jax.random.uniform(k_a, (N, N)) < 0.1).astype(jnp.float32)
    adj = jnp.maximum(adj, adj.T) + jnp.eye(N, dtype=jnp.float32)
    deg = jnp.sum(adj, axis=1)
    d_inv_sqrt = 1.0 / jnp.sqrt(deg)
    A_norm = adj * d_inv_sqrt[:, None] * d_inv_sqrt[None, :]

    X = jax.random.normal(k_x, (N, input_size), dtype=jnp.float32)

    # Parameter init matching the module: normal(0, std=2/(in+out)).
    var = 2.0 / (input_size + output_size)
    W = var * jax.random.normal(k_w, (input_size, output_size), dtype=jnp.float32)
    bias = var * jax.random.normal(k_b, (output_size,), dtype=jnp.float32)

    # Tolerances account for the bf16 streaming of A / X / mask (f32 accumulate).
    tol = dict(atol=3e-2, rtol=3e-2)

    # 1) Eval-mode (dropout = identity): check against a pure-JAX reference.
    out_eval = jax.block_until_ready(
        graph_convolve(A_norm, X, W, bias, training=False))
    ref_eval = (A_norm @ X) @ W + bias[None, :]
    assert out_eval.shape == (N, output_size)
    assert jnp.allclose(out_eval, ref_eval, **tol), "eval-mode mismatch vs reference"

    # 2) Train-mode (dropout p=0.2): check against a reference using the same
    #    deterministic mask (replicated here from the same key).
    p = 0.2
    out_train = jax.block_until_ready(
        graph_convolve(A_norm, X, W, bias, dropout_key=k_drop, training=True, p=p))
    u = jax.random.uniform(k_drop, (N, input_size), dtype=jnp.float32)
    mask_ref = jnp.where(u >= p, 1.0 / (1.0 - p), 0.0).astype(jnp.float32)
    ref_train = ((A_norm @ X) * mask_ref) @ W + bias[None, :]
    assert out_train.shape == (N, output_size)
    assert jnp.allclose(out_train, ref_train, **tol), "train-mode mismatch vs reference"

    # 3) No-bias variant (module default bias=False).
    out_nobias = jax.block_until_ready(
        graph_convolve(A_norm, X, W, None, training=False))
    assert jnp.allclose(out_nobias, (A_norm @ X) @ W, **tol), \
        "no-bias mismatch vs reference"

    print("KERNEL_OK")
</pallas_src>

<mosaic_0001>
module attributes {stable_mosaic.version = 11 : i64} {
  func.func @_gcn_eval_kernel(%arg0: i32, %arg1: memref<64x64xbf16, #tpu.memory_space<vmem>>, %arg2: memref<64x128xbf16, #tpu.memory_space<vmem>>, %arg3: memref<1x128xf32, #tpu.memory_space<vmem>>, %arg4: memref<64x128xf32, #tpu.memory_space<vmem>>) attributes {dimension_semantics = [#tpu.dimension_semantics<parallel>], iteration_bounds = array<i64: 1>, scalar_prefetch = 0 : i64, scratch_operands = 0 : i64, tpu.core_type = #tpu.core_type<tc>, window_params = [{transform_indices = @transform_0, window_bounds = array<i64: 64, 64>}, {pipeline_mode = #tpu.pipeline_mode<synchronous>, transform_indices = @transform_1, window_bounds = array<i64: 64, 128>}, {pipeline_mode = #tpu.pipeline_mode<synchronous>, transform_indices = @transform_2, window_bounds = array<i64: 1, 128>}, {transform_indices = @transform_3, window_bounds = array<i64: 64, 128>}]} {
    %c0 = arith.constant 0 : index
    %c0_0 = arith.constant 0 : index
    %0 = vector.load %arg1[%c0, %c0_0] : memref<64x64xbf16, #tpu.memory_space<vmem>>, vector<64x64xbf16>
    %c0_1 = arith.constant 0 : index
    %c0_2 = arith.constant 0 : index
    %1 = vector.load %arg2[%c0_1, %c0_2] : memref<64x128xbf16, #tpu.memory_space<vmem>>, vector<64x128xbf16>
    %cst = arith.constant dense<0.000000e+00> : vector<64x128xf32>
    %2 = tpu.matmul %0, %1, %cst {dimension_numbers = #tpu.dot_dimension_numbers<[1], [0], [0], [1], [0, 0, 1, 1], [], []>} : vector<64x64xbf16>, vector<64x128xbf16>, vector<64x128xf32> -> vector<64x128xf32>
    %c0_3 = arith.constant 0 : index
    %c0_4 = arith.constant 0 : index
    %3 = vector.load %arg3[%c0_3, %c0_4] : memref<1x128xf32, #tpu.memory_space<vmem>>, vector<1x128xf32>
    %4 = vector.broadcast %3 : vector<1x128xf32> to vector<64x128xf32>
    %5 = arith.addf %2, %4 : vector<64x128xf32>
    %c0_5 = arith.constant 0 : index
    %c0_6 = arith.constant 0 : index
    %6 = vector.load %arg4[%c0_5, %c0_6] : memref<64x128xf32, #tpu.memory_space<vmem>>, vector<64x128xf32>
    tpu.vector_store %arg4[%c0_5, %c0_6], %5 {strides = array<i32>} : memref<64x128xf32, #tpu.memory_space<vmem>>, vector<64x128xf32>,
    return
  }
  func.func @transform_0(%arg0: i32) -> (i32, i32) {
    %c0_i32 = arith.constant 0 : i32
    %c0_i32_0 = arith.constant 0 : i32
    return %arg0, %c0_i32 : i32, i32
  }
  func.func @transform_1(%arg0: i32) -> (i32, i32) {
    %c0_i32 = arith.constant 0 : i32
    %c0_i32_0 = arith.constant 0 : i32
    %c0_i32_1 = arith.constant 0 : i32
    return %c0_i32, %c0_i32_0 : i32, i32
  }
  func.func @transform_2(%arg0: i32) -> (i32, i32) {
    %c0_i32 = arith.constant 0 : i32
    %c0_i32_0 = arith.constant 0 : i32
    %c0_i32_1 = arith.constant 0 : i32
    return %c0_i32, %c0_i32_0 : i32, i32
  }
  func.func @transform_3(%arg0: i32) -> (i32, i32) {
    %c0_i32 = arith.constant 0 : i32
    %c0_i32_0 = arith.constant 0 : i32
    return %arg0, %c0_i32 : i32, i32
  }
}

module attributes {stable_mosaic.version = 11 : i64} {
  func.func @_gcn_eval_kernel(%arg0: i32, %arg1: memref<64x64xbf16, #tpu.memory_space<vmem>>, %arg2: memref<64x128xbf16, #tpu.memory_space<vmem>>, %arg3: memref<1x128xf32, #tpu.memory_space<vmem>>, %arg4: memref<64x128xf32, #tpu.memory_space<vmem>>) attributes {dimension_semantics = [#tpu.dimension_semantics<parallel>], iteration_bounds = array<i64: 1>, scalar_prefetch = 0 : i64, scratch_operands = 0 : i64, tpu.core_type = #tpu.core_type<tc>, window_params = [{transform_indices = @transform_0, window_bounds = array<i64: 64, 64>}, {pipeline_mode = #tpu.pipeline_mode<synchronous>, transform_indices = @transform_1, window_bounds = array<i64: 64, 128>}, {pipeline_mode = #tpu.pipeline_mode<synchronous>, transform_indices = @transform_2, window_bounds = array<i64: 1, 128>}, {transform_indices = @transform_3, window_bounds = array<i64: 64, 128>}]} {
    %c0 = arith.constant 0 : index
    %c0_0 = arith.constant 0 : index
    %0 = vector.load %arg1[%c0, %c0_0] : memref<64x64xbf16, #tpu.memory_space<vmem>>, vector<64x64xbf16>
    %c0_1 = arith.constant 0 : index
    %c0_2 = arith.constant 0 : index
    %1 = vector.load %arg2[%c0_1, %c0_2] : memref<64x128xbf16, #tpu.memory_space<vmem>>, vector<64x128xbf16>
    %cst = arith.constant dense<0.000000e+00> : vector<64x128xf32>
    %2 = tpu.matmul %0, %1, %cst {dimension_numbers = #tpu.dot_dimension_numbers<[1], [0], [0], [1], [0, 0, 1, 1], [], []>} : vector<64x64xbf16>, vector<64x128xbf16>, vector<64x128xf32> -> vector<64x128xf32>
    %c0_3 = arith.constant 0 : index
    %c0_4 = arith.constant 0 : index
    %3 = vector.load %arg3[%c0_3, %c0_4] : memref<1x128xf32, #tpu.memory_space<vmem>>, vector<1x128xf32>
    %4 = vector.broadcast %3 : vector<1x128xf32> to vector<64x128xf32>
    %5 = arith.addf %2, %4 : vector<64x128xf32>
    %c0_5 = arith.constant 0 : index
    %c0_6 = arith.constant 0 : index
    %6 = vector.load %arg4[%c0_5, %c0_6] : memref<64x128xf32, #tpu.memory_space<vmem>>, vector<64x128xf32>
    tpu.vector_store %arg4[%c0_5, %c0_6], %5 {strides = array<i32>} : memref<64x128xf32, #tpu.memory_space<vmem>>, vector<64x128xf32>,
    return
  }
  func.func @transform_0(%arg0: i32) -> (i32, i32) {
    %c0_i32 = arith.constant 0 : i32
    %c0_i32_0 = arith.constant 0 : i32
    return %arg0, %c0_i32 : i32, i32
  }
  func.func @transform_1(%arg0: i32) -> (i32, i32) {
    %c0_i32 = arith.constant 0 : i32
    %c0_i32_0 = arith.constant 0 : i32
    %c0_i32_1 = arith.constant 0 : i32
    return %c0_i32, %c0_i32_0 : i32, i32
  }
  func.func @transform_2(%arg0: i32) -> (i32, i32) {
    %c0_i32 = arith.constant 0 : i32
    %c0_i32_0 = arith.constant 0 : i32
    %c0_i32_1 = arith.constant 0 : i32
    return %c0_i32, %c0_i32_0 : i32, i32
  }
  func.func @transform_3(%arg0: i32) -> (i32, i32) {
    %c0_i32 = arith.constant 0 : i32
    %c0_i32_0 = arith.constant 0 : i32
    return %arg0, %c0_i32 : i32, i32
  }
}

</mosaic_0001>

<bundles_post_ra>
// kernel: tpu_custom_call.1
= control target key start
LH: loop header
LB: loop body
LE: loop exit
PB: predicated region body
PF: predicated region fallthrough
CT: control target
= control target key end

     0   :  { %8 = vsyncpa [#allocation3], 0  ;;  %s363_s0 = inlined_call_operand.hbm [shape: bf16[64,64], index: 0, kind: input, shape index: {}]   ;;  %s364_s1 = inlined_call_operand.hbm [shape: bf16[64,128], index: 1, kind: input, shape index: {}]   ;;  %s365_s2 = inlined_call_operand.vmem [shape: f32[1,128], index: 2, kind: input, shape index: {}]   ;;  %s366_s3 = inlined_call_operand.hbm [shape: f32[64,128], index: 3, kind: output, shape index: {}]  }
   0x1   :  { %9 = vsyncpa [#allocation6], 0 }
   0x2   :  { %10 = vsyncpa [#allocation4], 0  ;;  %s15_s14 = sshll.u32 %s363_s0, 4  ;;  %s324_s15 = smov [#allocation2]   ;;  %s16_s14 = int_to_ptr.hbm [resolvable:$true] %s15_s14 }
   0x3   :  { %s17_s16 = sshll.u32 %s324_s15, 4  ;;  %s28_s19 = sshll.u32 %s364_s1, 4  ;;  %s18_s16 = int_to_ptr.vmem [resolvable:$true] %s17_s16  ;;  %s29_s19 = int_to_ptr.hbm [resolvable:$true] %s28_s19 }
   0x4   :  { %s325_s20 = smov 64   ;;  %s326_s21 = smov 4  }
   0x5   :  { %23 = dma.hbm_to_vmem [thread:$0]  %s16_s14, 512, %s18_s16, [#allocation3], %s325_s20, %s325_s20, %s326_s21  }
   0x6   :  { %s327_s22 = smov [#allocation5]  }
   0x7   :  { %s30_s23 = sshll.u32 %s327_s22, 4  ;;  %s31_s23 = int_to_ptr.vmem [resolvable:$true] %s30_s23 }
   0x8   :  { %36 = dma.hbm_to_vmem [thread:$0]  %s29_s19, 512, %s31_s23, [#allocation6], %s325_s20, %s325_s20, %s326_s21  }
   0x9   :  { %318 = dma.done.wait [#allocation3], 512  }
   0xa   :  { %319 = vsyncadd [#allocation3], 4294966784 }
   0xb   :  { %320 = dma.done.wait [#allocation6], 512  }
   0xc   :  { %321 = vsyncadd [#allocation6], 4294966784  ;;  %v225_v0 = vld [vmem:[#allocation5 + $0x18] sm:$0xff]  ;;  %v224_v1 = vld [vmem:[#allocation5 + $0x10] sm:$0xff]  ;;  %vm112_vm0 = vcmask 523264   ;;  %s328_s24 = smov [#allocation7]  }
   0xd   :  { %129 = vmatpush.bf16.msra.mxu0 %v225_v0  ;;  %226 = vmatpush.bf16.msra.mxu1 %v225_v0  ;;  %v223_v2 = vld [vmem:[#allocation5 + $0x8] sm:$0xff]  ;;  %v222_v3 = vld [vmem:[#allocation5] sm:$0xff]  ;;  %v220_v6 = vld [vmem:[#allocation2 + $0x10] sm:$0xff]  ;;  %s168_s27 = sshll.u32 %s366_s3, 4  ;;  %s329_s28 = smov 128   ;;  %s169_s27 = int_to_ptr.hbm [resolvable:$true] %s168_s27 }
   0xe   :  { %227 = vmatpush.bf16.msra.mxu2 %v225_v0  ;;  %228 = vmatpush.bf16.msra.mxu3 %v225_v0  ;;  %v218_v4 = vld [vmem:[#allocation2] sm:$0xff]  ;;  %v219_v5 = vld [vmem:[#allocation2 + $0x8] sm:$0xff]  ;;  %v221_v7 = vld [vmem:[#allocation2 + $0x18] sm:$0xff]  ;;  %s330_s29 = smov 8  }
   0xf   :  { %v245_v8 = vld [vmem:[%s365_s2] ss:$0 sm:$0xff]  ;;  %s166_s2 = sshll.u32 %s328_s24, 4  ;;  %s167_s2 = int_to_ptr.vmem [resolvable:$true] %s166_s2 }
  0x11   :  { %130 = vmatpush.bf16.msra.mxu0 %v224_v1  ;;  %229 = vmatpush.bf16.msra.mxu1 %v224_v1 }
  0x12   :  { %230 = vmatpush.bf16.msra.mxu2 %v224_v1  ;;  %231 = vmatpush.bf16.msra.mxu3 %v224_v1 }
  0x15   :  { %131 = vmatpush.bf16.msra.mxu0 %v223_v2  ;;  %232 = vmatpush.bf16.msra.mxu1 %v223_v2 }
  0x16   :  { %233 = vmatpush.bf16.msra.mxu2 %v223_v2  ;;  %234 = vmatpush.bf16.msra.mxu3 %v223_v2 }
  0x19   :  { %132 = vmatpush.bf16.msra.mxu0 %v222_v3  ;;  %235 = vmatpush.bf16.msra.mxu1 %v222_v3 }
  0x1a   :  { %236 = vmatpush.bf16.msra.mxu2 %v222_v3  ;;  %237 = vmatpush.bf16.msra.mxu3 %v222_v3 }
  0x1c   :  { %214 = vmatmul.msk.bf16.vlgmr.msra.gmra.mxu0 %vm112_vm0, %v218_v4  ;;  %215 = vmatmul.msk.bf16.vlgmr.msra.gmra.mxu1 %vm112_vm0, %v219_v5 }
  0x1d   :  { %216 = vmatmul.msk.bf16.vlgmr.msra.gmra.mxu2 %vm112_vm0, %v220_v6  ;;  %217 = vmatmul.msk.bf16.vlgmr.msra.gmra.mxu3 %vm112_vm0, %v221_v7 }
  0x99   :  { %v134_v9 = vpop.f32.mrf.mxu0  ;;  %v139_v10 = vpop.f32.mrf.mxu1 }
  0x9a   :  { %v135_v11 = vadd.f32 %v245_v8, %v134_v9  ;;  %v140_v12 = vadd.f32 %v245_v8, %v139_v10 }
  0x9c   :  { %154 = vst [vmem:[#allocation7] sm:$0xff] %v135_v11 }
  0x9d   :  { %156 = vst [vmem:[#allocation7 + $0x10] sm:$0xff] %v140_v12 }
  0xa0   :  { %v144_v13 = vpop.f32.mrf.mxu2  ;;  %v149_v14 = vpop.f32.mrf.mxu3 }
  0xa1   :  { %v145_v15 = vadd.f32 %v245_v8, %v144_v13  ;;  %v150_v16 = vadd.f32 %v245_v8, %v149_v14  ;;  %v136_v17 = vpop.f32.mrf.mxu0  ;;  %v141_v18 = vpop.f32.mrf.mxu1 }
  0xa2   :  { %v137_v19 = vadd.f32 %v245_v8, %v136_v17  ;;  %v142_v20 = vadd.f32 %v245_v8, %v141_v18 }
  0xa3   :  { %158 = vst [vmem:[#allocation7 + $0x20] sm:$0xff] %v145_v15 }
  0xa4   :  { %160 = vst [vmem:[#allocation7 + $0x30] sm:$0xff] %v150_v16 }
  0xa5   :  { %155 = vst [vmem:[#allocation7 + $0x8] sm:$0xff] %v137_v19 }
  0xa6   :  { %157 = vst [vmem:[#allocation7 + $0x18] sm:$0xff] %v142_v20 }
  0xa8   :  { %v146_v21 = vpop.f32.mrf.mxu2  ;;  %v151_v22 = vpop.f32.mrf.mxu3 }
  0xa9   :  { %v147_v23 = vadd.f32 %v245_v8, %v146_v21  ;;  %v152_v24 = vadd.f32 %v245_v8, %v151_v22 }
  0xab   :  { %159 = vst [vmem:[#allocation7 + $0x28] sm:$0xff] %v147_v23 }
  0xac   :  { %161 = vst [vmem:[#allocation7 + $0x38] sm:$0xff] %v152_v24 }
  0xad   :  { %174 = dma.vmem_to_hbm [thread:$0]  %s167_s2, 1024, %s169_s27, [#allocation4], %s329_s28, %s329_s28, %s330_s29  }
  0xae   :  { %322 = dma.done.wait [#allocation4], 1024  }
  0xaf   :  { %323 = vsyncadd [#allocation4], 4294966272 }
  0xb0   :  { %179 = vsyncpa [#allocation3], 1 }
  0xb1   :  { %180 = vsyncpa [#allocation6], 1 }
  0xb2   :  { %181 = vsyncpa [#allocation4], 1 }

// kernel: tpu_custom_call.1
= control target key start
LH: loop header
LB: loop body
LE: loop exit
PB: predicated region body
PF: predicated region fallthrough
CT: control target
= control target key end

     0   :  { %8 = vsyncpa [#allocation3], 0  ;;  %s363_s0 = inlined_call_operand.hbm [shape: bf16[64,64], index: 0, kind: input, shape index: {}]   ;;  %s364_s1 = inlined_call_operand.hbm [shape: bf16[64,128], index: 1, kind: input, shape index: {}]   ;;  %s365_s2 = inlined_call_operand.vmem [shape: f32[1,128], index: 2, kind: input, shape index: {}]   ;;  %s366_s3 = inlined_call_operand.hbm [shape: f32[64,128], index: 3, kind: output, shape index: {}]  }
   0x1   :  { %9 = vsyncpa [#allocation6], 0 }
   0x2   :  { %10 = vsyncpa [#allocation4], 0  ;;  %s15_s14 = sshll.u32 %s363_s0, 4  ;;  %s324_s15 = smov [#allocation2]   ;;  %s16_s14 = int_to_ptr.hbm [resolvable:$true] %s15_s14 }
   0x3   :  { %s17_s16 = sshll.u32 %s324_s15, 4  ;;  %s28_s19 = sshll.u32 %s364_s1, 4  ;;  %s18_s16 = int_to_ptr.vmem [resolvable:$true] %s17_s16  ;;  %s29_s19 = int_to_ptr.hbm [resolvable:$true] %s28_s19 }
   0x4   :  { %s325_s20 = smov 64   ;;  %s326_s21 = smov 4  }
   0x5   :  { %23 = dma.hbm_to_vmem [thread:$0]  %s16_s14, 512, %s18_s16, [#allocation3], %s325_s20, %s325_s20, %s326_s21  }
   0x6   :  { %s327_s22 = smov [#allocation5]  }
   0x7   :  { %s30_s23 = sshll.u32 %s327_s22, 4  ;;  %s31_s23 = int_to_ptr.vmem [resolvable:$true] %s30_s23 }
   0x8   :  { %36 = dma.hbm_to_vmem [thread:$0]  %s29_s19, 512, %s31_s23, [#allocation6], %s325_s20, %s325_s20, %s326_s21  }
   0x9   :  { %318 = dma.done.wait [#allocation3], 512  }
   0xa   :  { %319 = vsyncadd [#allocation3], 4294966784 }
   0xb   :  { %320 = dma.done.wait [#allocation6], 512  }
   0xc   :  { %321 = vsyncadd [#allocation6], 4294966784  ;;  %v225_v0 = vld [vmem:[#allocation5 + $0x18] sm:$0xff]  ;;  %v224_v1 = vld [vmem:[#allocation5 + $0x10] sm:$0xff]  ;;  %vm112_vm0 = vcmask 523264   ;;  %s328_s24 = smov [#allocation7]  }
   0xd   :  { %129 = vmatpush.bf16.msra.mxu0 %v225_v0  ;;  %226 = vmatpush.bf16.msra.mxu1 %v225_v0  ;;  %v223_v2 = vld [vmem:[#allocation5 + $0x8] sm:$0xff]  ;;  %v222_v3 = vld [vmem:[#allocation5] sm:$0xff]  ;;  %v220_v6 = vld [vmem:[#allocation2 + $0x10] sm:$0xff]  ;;  %s168_s27 = sshll.u32 %s366_s3, 4  ;;  %s329_s28 = smov 128   ;;  %s169_s27 = int_to_ptr.hbm [resolvable:$true] %s168_s27 }
   0xe   :  { %227 = vmatpush.bf16.msra.mxu2 %v225_v0  ;;  %228 = vmatpush.bf16.msra.mxu3 %v225_v0  ;;  %v218_v4 = vld [vmem:[#allocation2] sm:$0xff]  ;;  %v219_v5 = vld [vmem:[#allocation2 + $0x8] sm:$0xff]  ;;  %v221_v7 = vld [vmem:[#allocation2 + $0x18] sm:$0xff]  ;;  %s330_s29 = smov 8  }
   0xf   :  { %v245_v8 = vld [vmem:[%s365_s2] ss:$0 sm:$0xff]  ;;  %s166_s2 = sshll.u32 %s328_s24, 4  ;;  %s167_s2 = int_to_ptr.vmem [resolvable:$true] %s166_s2 }
  0x11   :  { %130 = vmatpush.bf16.msra.mxu0 %v224_v1  ;;  %229 = vmatpush.bf16.msra.mxu1 %v224_v1 }
  0x12   :  { %230 = vmatpush.bf16.msra.mxu2 %v224_v1  ;;  %231 = vmatpush.bf16.msra.mxu3 %v224_v1 }
  0x15   :  { %131 = vmatpush.bf16.msra.mxu0 %v223_v2  ;;  %232 = vmatpush.bf16.msra.mxu1 %v223_v2 }
  0x16   :  { %233 = vmatpush.bf16.msra.mxu2 %v223_v2  ;;  %234 = vmatpush.bf16.msra.mxu3 %v223_v2 }
  0x19   :  { %132 = vmatpush.bf16.msra.mxu0 %v222_v3  ;;  %235 = vmatpush.bf16.msra.mxu1 %v222_v3 }
  0x1a   :  { %236 = vmatpush.bf16.msra.mxu2 %v222_v3  ;;  %237 = vmatpush.bf16.msra.mxu3 %v222_v3 }
  0x1c   :  { %214 = vmatmul.msk.bf16.vlgmr.msra.gmra.mxu0 %vm112_vm0, %v218_v4  ;;  %215 = vmatmul.msk.bf16.vlgmr.msra.gmra.mxu1 %vm112_vm0, %v219_v5 }
  0x1d   :  { %216 = vmatmul.msk.bf16.vlgmr.msra.gmra.mxu2 %vm112_vm0, %v220_v6  ;;  %217 = vmatmul.msk.bf16.vlgmr.msra.gmra.mxu3 %vm112_vm0, %v221_v7 }
  0x99   :  { %v134_v9 = vpop.f32.mrf.mxu0  ;;  %v139_v10 = vpop.f32.mrf.mxu1 }
  0x9a   :  { %v135_v11 = vadd.f32 %v245_v8, %v134_v9  ;;  %v140_v12 = vadd.f32 %v245_v8, %v139_v10 }
  0x9c   :  { %154 = vst [vmem:[#allocation7] sm:$0xff] %v135_v11 }
  0x9d   :  { %156 = vst [vmem:[#allocation7 + $0x10] sm:$0xff] %v140_v12 }
  0xa0   :  { %v144_v13 = vpop.f32.mrf.mxu2  ;;  %v149_v14 = vpop.f32.mrf.mxu3 }
  0xa1   :  { %v145_v15 = vadd.f32 %v245_v8, %v144_v13  ;;  %v150_v16 = vadd.f32 %v245_v8, %v149_v14  ;;  %v136_v17 = vpop.f32.mrf.mxu0  ;;  %v141_v18 = vpop.f32.mrf.mxu1 }
  0xa2   :  { %v137_v19 = vadd.f32 %v245_v8, %v136_v17  ;;  %v142_v20 = vadd.f32 %v245_v8, %v141_v18 }
  0xa3   :  { %158 = vst [vmem:[#allocation7 + $0x20] sm:$0xff] %v145_v15 }
  0xa4   :  { %160 = vst [vmem:[#allocation7 + $0x30] sm:$0xff] %v150_v16 }
  0xa5   :  { %155 = vst [vmem:[#allocation7 + $0x8] sm:$0xff] %v137_v19 }
  0xa6   :  { %157 = vst [vmem:[#allocation7 + $0x18] sm:$0xff] %v142_v20 }
  0xa8   :  { %v146_v21 = vpop.f32.mrf.mxu2  ;;  %v151_v22 = vpop.f32.mrf.mxu3 }
  0xa9   :  { %v147_v23 = vadd.f32 %v245_v8, %v146_v21  ;;  %v152_v24 = vadd.f32 %v245_v8, %v151_v22 }
  0xab   :  { %159 = vst [vmem:[#allocation7 + $0x28] sm:$0xff] %v147_v23 }
  0xac   :  { %161 = vst [vmem:[#allocation7 + $0x38] sm:$0xff] %v152_v24 }
  0xad   :  { %174 = dma.vmem_to_hbm [thread:$0]  %s167_s2, 1024, %s169_s27, [#allocation4], %s329_s28, %s329_s28, %s330_s29  }
  0xae   :  { %322 = dma.done.wait [#allocation4], 1024  }
  0xaf   :  { %323 = vsyncadd [#allocation4], 4294966272 }
  0xb0   :  { %179 = vsyncpa [#allocation3], 1 }
  0xb1   :  { %180 = vsyncpa [#allocation6], 1 }
  0xb2   :  { %181 = vsyncpa [#allocation4], 1 }

</bundles_post_ra>
